<compile_context>
chip_gen: v7x
topology: tpu7x:2x2x1
jax: 0.10.0
libtpu: 0.0.40
codegen_flags: <defaults>
</compile_context>

<pallas_src>
import functools

import jax
import jax.numpy as jnp
from jax import lax
from jax.experimental import pallas as pl
from jax.experimental.pallas import tpu as pltpu

LANE = 128
SUBLANE = 8


def _round_up(x, m):
    return (x + m - 1) // m * m


def _cdiv(a, b):
    return (a + b - 1) // b


def actor_cql_kernel(obs_ref, w1_ref, b1_ref, w2_ref, b2_ref, w3_ref, b3_ref,
                     out_ref):
    # Static tile geometry, derived from the block shapes.
    tb = obs_ref.shape[0]                    # batch rows per grid step
    g_rows, out_lanes = out_ref.shape        # packed output rows / lanes
    rows_per = tb // g_rows                  # batch rows packed per output row
    a_pad = out_lanes // rows_per            # padded per-row action width

    x = obs_ref[...]                                              # (tb, d_obs) f32

    # FC1 + ReLU.  Zero-padded weight columns + zero bias keep padded hidden
    # lanes exactly 0, so valid lanes match the unpadded math bit-for-bit.
    h1 = jnp.maximum(
        jnp.dot(x, w1_ref[...], preferred_element_type=jnp.float32)
        + b1_ref[...], 0.0)

    # FC2 + ReLU.  (Weights may be bf16 on v5e; accumulation stays f32.)
    h2 = jnp.maximum(
        jnp.dot(h1.astype(w2_ref.dtype), w2_ref[...],
                preferred_element_type=jnp.float32) + b2_ref[...], 0.0)

    # FC3 pre-activation.  w3 columns are replicated `rows_per` times, so each
    # group of a_pad lanes of h3 holds that row's action logits.
    h3 = jnp.dot(h2.astype(w3_ref.dtype), w3_ref[...],
                 preferred_element_type=jnp.float32)              # (tb, out_lanes)

    if rows_per > 1:
        # Pack rows_per consecutive batch rows into one lane-dense output row:
        #   packed[g, j*a_pad + k] = h3[g*rows_per + j, j*a_pad + k]
        # The reshape only splits the leading dim (layout preserving); the
        # select + sublane reduction run on VPU/XLU slots which have slack.
        # jnp.where (not a 0/1 multiply) so garbage rows of a ragged final
        # block can never leak (0 * NaN) into valid lanes of the same group.
        h3r = h3.reshape(g_rows, rows_per, out_lanes)
        j_idx = lax.broadcasted_iota(jnp.int32, (rows_per, out_lanes), 0)
        c_idx = lax.broadcasted_iota(jnp.int32, (rows_per, out_lanes), 1)
        sel = (c_idx // a_pad) == j_idx                  # (rows_per, out_lanes)
        h3 = jnp.sum(jnp.where(sel[None, :, :], h3r, 0.0), axis=1)

    # Bias (replicated to match the packed layout), tanh and (x + 1) * 5 on the
    # *packed* tile -> ~rows_per x fewer EUP tanh ops than pre-pack activation.
    out_ref[...] = ((jnp.tanh(h3 + b3_ref[...]) + 1.0) * 5.0).astype(out_ref.dtype)


@functools.partial(jax.jit,
                   static_argnames=("tile_b", "min_grid_steps", "use_bf16_matmul"))
def actor_cql_forward(obs, params, *, tile_b=2048, min_grid_steps=4,
                      use_bf16_matmul=False):
    """Fused ActorCQL forward: obs (B, dim_observation) f32 -> (B, dim_action)."""
    obs = obs.astype(jnp.float32)
    w1, b1 = params["w1"], params["b1"]
    w2, b2 = params["w2"], params["b2"]
    w3, b3 = params["w3"], params["b3"]

    B, d_obs = obs.shape
    hidden = w1.shape[1]
    dim_action = w3.shape[1]

    # ---------------- static geometry ----------------
    hp = _round_up(hidden, LANE)                 # hidden padded to 128 lanes
    if dim_action <= LANE:
        a_pad = 1
        while a_pad < dim_action:                # next pow2 -> divides 128
            a_pad *= 2
    else:
        a_pad = _round_up(dim_action, LANE)      # degenerate: no packing

    # rows_per batch rows share one lane-dense output row (rows_per*a_pad lanes).
    # Shrink for tiny batches so the minimum tile (8*rows_per) never exceeds B.
    rp_max = max(1, LANE // a_pad)
    groups8 = max(1, _round_up(B, SUBLANE) // SUBLANE)
    rows_per = 1
    while rows_per * 2 <= min(rp_max, groups8):
        rows_per *= 2
    out_lanes = rows_per * a_pad

    # ---------------- batch tiling ----------------
    unit = SUBLANE * rows_per                    # tile granularity
    b_ceil = _round_up(B, unit)
    tb = min(_round_up(max(int(tile_b), unit), unit), b_ceil)
    if b_ceil // tb < min_grid_steps:
        # >= min_grid_steps grid steps when possible (v7x megacore + pipelining).
        tb = min(b_ceil, max(unit, _round_up(_cdiv(b_ceil, min_grid_steps), unit)))
    grid_n = _cdiv(B, tb)       # ragged tail handled as a Pallas partial block;
                                # no full-array jnp.pad copy of obs.
    out_rows = _cdiv(B, rows_per)

    # ---------------- weight prep (tiny; zero padding keeps pad lanes at 0) ----
    def pad2(a, r, c):
        a = a.astype(jnp.float32)
        return jnp.pad(a, ((0, r - a.shape[0]), (0, c - a.shape[1])))

    w1p, b1p = pad2(w1, d_obs, hp), pad2(b1, 1, hp)
    w2p, b2p = pad2(w2, hp, hp), pad2(b2, 1, hp)
    w3p, b3p = pad2(w3, hp, a_pad), pad2(b3, 1, a_pad)
    if rows_per > 1:
        w3p = jnp.tile(w3p, (1, rows_per))       # replicate for packed output
        b3p = jnp.tile(b3p, (1, rows_per))
    if use_bf16_matmul:
        # v5e option (~4-8x MXU throughput); revalidate tolerance before use.
        w2p = w2p.astype(jnp.bfloat16)
        w3p = w3p.astype(jnp.bfloat16)

    const = lambda a: pl.BlockSpec(a.shape, lambda i: (0, 0))   # resident blocks

    weight_bytes = 4 * (d_obs * hp + hp * hp + hp * out_lanes + 2 * hp + out_lanes)
    cost = pl.CostEstimate(
        flops=2 * B * hp * (d_obs + hp + out_lanes),
        transcendentals=B * a_pad,
        bytes_accessed=4 * (B * d_obs + out_rows * out_lanes) + weight_bytes)

    out = pl.pallas_call(
        actor_cql_kernel,
        out_shape=jax.ShapeDtypeStruct((out_rows, out_lanes), jnp.float32),
        grid=(grid_n,),
        in_specs=[
            pl.BlockSpec((tb, d_obs), lambda i: (i, 0)),        # obs: batch-tiled
            const(w1p), const(b1p),
            const(w2p), const(b2p),
            const(w3p), const(b3p),
        ],
        out_specs=pl.BlockSpec((tb // rows_per, out_lanes), lambda i: (i, 0)),
        compiler_params=pltpu.CompilerParams(
            dimension_semantics=("parallel",),
            vmem_limit_bytes=32 * 1024 * 1024),
        cost_estimate=cost,
    )(obs, w1p, b1p, w2p, b2p, w3p, b3p)

    # Free contiguous un-packing: (out_rows, rows_per*a_pad) -> (out_rows*rows_per, a_pad)
    return out.reshape(out_rows * rows_per, a_pad)[:B, :dim_action]


def init_params(key, dim_observation, dim_action):
    """Deterministic init mimicking torch.nn.Linear default:
    U(-1/sqrt(fan_in), 1/sqrt(fan_in)) for weight and bias.
    Weights are stored as (in_features, out_features)."""
    def linear(k, fan_in, fan_out):
        kw, kb = jax.random.split(k)
        bound = 1.0 / jnp.sqrt(jnp.float32(fan_in))
        w = jax.random.uniform(kw, (fan_in, fan_out), jnp.float32,
                               minval=-bound, maxval=bound)
        b = jax.random.uniform(kb, (1, fan_out), jnp.float32,
                               minval=-bound, maxval=bound)
        return w, b

    k1, k2, k3 = jax.random.split(key, 3)
    w1, b1 = linear(k1, dim_observation, 10)
    w2, b2 = linear(k2, 10, 10)
    w3, b3 = linear(k3, 10, dim_action)
    return {"w1": w1, "b1": b1, "w2": w2, "b2": b2, "w3": w3, "b3": b3}


def reference_forward(obs, params):
    h1 = jnp.maximum(obs @ params["w1"] + params["b1"], 0.0)
    h2 = jnp.maximum(h1 @ params["w2"] + params["b2"], 0.0)
    return (jnp.tanh(h2 @ params["w3"] + params["b3"]) + 1.0) * 5.0


if __name__ == "__main__":
    key = jax.random.PRNGKey(0)
    k_par, k_obs_a, k_obs_b = jax.random.split(key, 3)

    dim_observation, dim_action = 16, 4
    params = init_params(k_par, dim_observation, dim_action)

    # Small batch (exercises the degenerate rows_per=1 / single-step path).
    obs_small = jax.random.normal(k_obs_a, (8, dim_observation), jnp.float32)
    out_small = jax.block_until_ready(actor_cql_forward(obs_small, params))
    ref_small = reference_forward(obs_small, params)
    assert out_small.shape == (8, dim_action)
    assert jnp.allclose(out_small, ref_small, atol=1e-4, rtol=1e-4), \
        "small-batch mismatch vs reference"

    # Larger ragged batch: exercises the packed 128-lane output, the multi-step
    # grid ("parallel" across v7x cores) and the un-padded partial final block.
    obs_big = jax.random.normal(k_obs_b, (1000, dim_observation), jnp.float32)
    out_big = jax.block_until_ready(actor_cql_forward(obs_big, params))
    ref_big = reference_forward(obs_big, params)
    assert out_big.shape == (1000, dim_action)
    assert jnp.allclose(out_big, ref_big, atol=1e-4, rtol=1e-4), \
        "large-batch mismatch vs reference"

    print("KERNEL_OK")
</pallas_src>

<mosaic_0001>
module attributes {stable_mosaic.version = 11 : i64} {
  func.func @actor_cql_kernel(%arg0: i32, %arg1: memref<8x16xf32, #tpu.memory_space<vmem>>, %arg2: memref<16x128xf32, #tpu.memory_space<vmem>>, %arg3: memref<1x128xf32, #tpu.memory_space<vmem>>, %arg4: memref<128x128xf32, #tpu.memory_space<vmem>>, %arg5: memref<1x128xf32, #tpu.memory_space<vmem>>, %arg6: memref<128x4xf32, #tpu.memory_space<vmem>>, %arg7: memref<1x4xf32, #tpu.memory_space<vmem>>, %arg8: memref<8x4xf32, #tpu.memory_space<vmem>>) attributes {dimension_semantics = [#tpu.dimension_semantics<parallel>], iteration_bounds = array<i64: 1>, scalar_prefetch = 0 : i64, scratch_operands = 0 : i64, tpu.core_type = #tpu.core_type<tc>, window_params = [{transform_indices = @transform_0, window_bounds = array<i64: 8, 16>}, {pipeline_mode = #tpu.pipeline_mode<synchronous>, transform_indices = @transform_1, window_bounds = array<i64: 16, 128>}, {pipeline_mode = #tpu.pipeline_mode<synchronous>, transform_indices = @transform_2, window_bounds = array<i64: 1, 128>}, {pipeline_mode = #tpu.pipeline_mode<synchronous>, transform_indices = @transform_3, window_bounds = array<i64: 128, 128>}, {pipeline_mode = #tpu.pipeline_mode<synchronous>, transform_indices = @transform_4, window_bounds = array<i64: 1, 128>}, {pipeline_mode = #tpu.pipeline_mode<synchronous>, transform_indices = @transform_5, window_bounds = array<i64: 128, 4>}, {pipeline_mode = #tpu.pipeline_mode<synchronous>, transform_indices = @transform_6, window_bounds = array<i64: 1, 4>}, {transform_indices = @transform_7, window_bounds = array<i64: 8, 4>}]} {
    %c0 = arith.constant 0 : index
    %c0_0 = arith.constant 0 : index
    %0 = vector.load %arg1[%c0, %c0_0] : memref<8x16xf32, #tpu.memory_space<vmem>>, vector<8x16xf32>
    %c0_1 = arith.constant 0 : index
    %c0_2 = arith.constant 0 : index
    %1 = vector.load %arg2[%c0_1, %c0_2] : memref<16x128xf32, #tpu.memory_space<vmem>>, vector<16x128xf32>
    %cst = arith.constant dense<0.000000e+00> : vector<8x128xf32>
    %2 = tpu.matmul %0, %1, %cst {dimension_numbers = #tpu.dot_dimension_numbers<[1], [0], [0], [1], [0, 0, 1, 1], [], []>} : vector<8x16xf32>, vector<16x128xf32>, vector<8x128xf32> -> vector<8x128xf32>
    %c0_3 = arith.constant 0 : index
    %c0_4 = arith.constant 0 : index
    %3 = vector.load %arg3[%c0_3, %c0_4] : memref<1x128xf32, #tpu.memory_space<vmem>>, vector<1x128xf32>
    %4 = vector.broadcast %3 : vector<1x128xf32> to vector<8x128xf32>
    %5 = arith.addf %2, %4 : vector<8x128xf32>
    %cst_5 = arith.constant 0.000000e+00 : f32
    %6 = vector.broadcast %cst_5 : f32 to vector<8x128xf32>
    %7 = arith.maximumf %5, %6 : vector<8x128xf32>
    %c0_6 = arith.constant 0 : index
    %c0_7 = arith.constant 0 : index
    %8 = vector.load %arg4[%c0_6, %c0_7] : memref<128x128xf32, #tpu.memory_space<vmem>>, vector<128x128xf32>
    %cst_8 = arith.constant dense<0.000000e+00> : vector<8x128xf32>
    %9 = tpu.matmul %7, %8, %cst_8 {dimension_numbers = #tpu.dot_dimension_numbers<[1], [0], [0], [1], [0, 0, 1, 1], [], []>} : vector<8x128xf32>, vector<128x128xf32>, vector<8x128xf32> -> vector<8x128xf32>
    %c0_9 = arith.constant 0 : index
    %c0_10 = arith.constant 0 : index
    %10 = vector.load %arg5[%c0_9, %c0_10] : memref<1x128xf32, #tpu.memory_space<vmem>>, vector<1x128xf32>
    %11 = vector.broadcast %10 : vector<1x128xf32> to vector<8x128xf32>
    %12 = arith.addf %9, %11 : vector<8x128xf32>
    %cst_11 = arith.constant 0.000000e+00 : f32
    %13 = vector.broadcast %cst_11 : f32 to vector<8x128xf32>
    %14 = arith.maximumf %12, %13 : vector<8x128xf32>
    %c0_12 = arith.constant 0 : index
    %c0_13 = arith.constant 0 : index
    %15 = vector.load %arg6[%c0_12, %c0_13] : memref<128x4xf32, #tpu.memory_space<vmem>>, vector<128x4xf32>
    %cst_14 = arith.constant dense<0.000000e+00> : vector<8x4xf32>
    %16 = tpu.matmul %14, %15, %cst_14 {dimension_numbers = #tpu.dot_dimension_numbers<[1], [0], [0], [1], [0, 0, 1, 1], [], []>} : vector<8x128xf32>, vector<128x4xf32>, vector<8x4xf32> -> vector<8x4xf32>
    %c0_15 = arith.constant 0 : index
    %c0_16 = arith.constant 0 : index
    %17 = vector.load %arg7[%c0_15, %c0_16] : memref<1x4xf32, #tpu.memory_space<vmem>>, vector<1x4xf32>
    %18 = vector.broadcast %17 : vector<1x4xf32> to vector<8x4xf32>
    %19 = arith.addf %16, %18 : vector<8x4xf32>
    %20 = math.tanh %19 : vector<8x4xf32>
    %cst_17 = arith.constant 1.000000e+00 : f32
    %21 = vector.broadcast %cst_17 : f32 to vector<8x4xf32>
    %22 = arith.addf %20, %21 : vector<8x4xf32>
    %cst_18 = arith.constant 5.000000e+00 : f32
    %23 = vector.broadcast %cst_18 : f32 to vector<8x4xf32>
    %24 = arith.mulf %22, %23 : vector<8x4xf32>
    %c0_19 = arith.constant 0 : index
    %c0_20 = arith.constant 0 : index
    %25 = vector.load %arg8[%c0_19, %c0_20] : memref<8x4xf32, #tpu.memory_space<vmem>>, vector<8x4xf32>
    tpu.vector_store %arg8[%c0_19, %c0_20], %24 {strides = array<i32>} : memref<8x4xf32, #tpu.memory_space<vmem>>, vector<8x4xf32>,
    return
  }
  func.func @transform_0(%arg0: i32) -> (i32, i32) {
    %c0_i32 = arith.constant 0 : i32
    %c0_i32_0 = arith.constant 0 : i32
    return %arg0, %c0_i32 : i32, i32
  }
  func.func @transform_1(%arg0: i32) -> (i32, i32) {
    %c0_i32 = arith.constant 0 : i32
    %c0_i32_0 = arith.constant 0 : i32
    %c0_i32_1 = arith.constant 0 : i32
    return %c0_i32, %c0_i32_0 : i32, i32
  }
  func.func @transform_2(%arg0: i32) -> (i32, i32) {
    %c0_i32 = arith.constant 0 : i32
    %c0_i32_0 = arith.constant 0 : i32
    %c0_i32_1 = arith.constant 0 : i32
    return %c0_i32, %c0_i32_0 : i32, i32
  }
  func.func @transform_3(%arg0: i32) -> (i32, i32) {
    %c0_i32 = arith.constant 0 : i32
    %c0_i32_0 = arith.constant 0 : i32
    %c0_i32_1 = arith.constant 0 : i32
    return %c0_i32, %c0_i32_0 : i32, i32
  }
  func.func @transform_4(%arg0: i32) -> (i32, i32) {
    %c0_i32 = arith.constant 0 : i32
    %c0_i32_0 = arith.constant 0 : i32
    %c0_i32_1 = arith.constant 0 : i32
    return %c0_i32, %c0_i32_0 : i32, i32
  }
  func.func @transform_5(%arg0: i32) -> (i32, i32) {
    %c0_i32 = arith.constant 0 : i32
    %c0_i32_0 = arith.constant 0 : i32
    %c0_i32_1 = arith.constant 0 : i32
    return %c0_i32, %c0_i32_0 : i32, i32
  }
  func.func @transform_6(%arg0: i32) -> (i32, i32) {
    %c0_i32 = arith.constant 0 : i32
    %c0_i32_0 = arith.constant 0 : i32
    %c0_i32_1 = arith.constant 0 : i32
    return %c0_i32, %c0_i32_0 : i32, i32
  }
  func.func @transform_7(%arg0: i32) -> (i32, i32) {
    %c0_i32 = arith.constant 0 : i32
    %c0_i32_0 = arith.constant 0 : i32
    return %arg0, %c0_i32 : i32, i32
  }
}

</mosaic_0001>

<bundles_post_ra>
// kernel: actor_cql_forward.1
= control target key start
LH: loop header
LB: loop body
LE: loop exit
PB: predicated region body
PF: predicated region fallthrough
CT: control target
= control target key end

     0   :  { %v481_v0 = vmov 0.0|0.0   ;;  %vm482_vm0 = vmmov 0   ;;  %v483_v3 = vmov 0.0   ;;  %vm36_vm1 = vcmask 130048   ;;  %s661_s1 = inlined_call_operand.vmem [shape: f32[16,128], index: 1, kind: input, shape index: {}]   ;;  %s662_s3 = inlined_call_operand.vmem [shape: f32[128,128], index: 3, kind: input, shape index: {}]   ;;  %s663_s0 = inlined_call_operand.vmem [shape: f32[8,16], index: 0, kind: input, shape index: {}]   ;;  %s664_s5 = inlined_call_operand.vmem [shape: f32[128,4], index: 5, kind: input, shape index: {}]   ;;  %s665_s2 = inlined_call_operand.vmem [shape: f32[1,128], index: 2, kind: input, shape index: {}]   ;;  %s666_s4 = inlined_call_operand.vmem [shape: f32[1,128], index: 4, kind: input, shape index: {}]   ;;  %s667_s6 = inlined_call_operand.vmem [shape: f32[1,4], index: 6, kind: input, shape index: {}]   ;;  %s668_s7 = inlined_call_operand.vmem [shape: f32[8,4], index: 7, kind: output, shape index: {}]  }
   0x1   :  { %425 = vmatprep.subr.bf16.mxu0 %v481_v0  ;;  %v27_v1 = vld [vmem:[%s661_s1] sm:$0xff]  ;;  %v28_v2 = vld [vmem:[%s661_s1 + $0x8] sm:$0xff]  ;;  %352 = vmatprep.mubr.msk.f32.mxu0 %vm482_vm0, %v483_v3  ;;  %v113_v7 = vld [vmem:[%s662_s3 + $0x10] sm:$0xff]  ;;  %vm301_vm2 = vcmask 31744  }
   0x2   :  { %v426_v4 = vpack.c.bf16 %v28_v2, %v27_v1  ;;  %428 = vmatprep.subr.bf16.mxu1 %v481_v0  ;;  %v111_v5 = vld [vmem:[%s662_s3] sm:$0xff]  ;;  %v112_v6 = vld [vmem:[%s662_s3 + $0x8] sm:$0xff]  ;;  %387 = vmatprep.mubr.msk.f32.mxu1 %vm482_vm0, %v483_v3  ;;  %v114_v9 = vld [vmem:[%s662_s3 + $0x18] sm:$0xff] }
   0x3   :  { %v429_v8 = vpack.c.bf16 %v112_v6, %v111_v5  ;;  %v26_v10 = vld [vmem:[%s663_s0] sm:$0xff]  ;;  %v432_v11 = vpack.c.bf16 %v114_v9, %v113_v7  ;;  %v116_v13 = vld [vmem:[%s662_s3 + $0x28] sm:$0xff]  ;;  %v117_v15 = vld [vmem:[%s662_s3 + $0x30] sm:$0xff] }
   0x4   :  { %427 = vmatpush3.bf16.msra.mxu0 %v426_v4  ;;  %v115_v12 = vld [vmem:[%s662_s3 + $0x20] sm:$0xff]  ;;  %v118_v16 = vld [vmem:[%s662_s3 + $0x38] sm:$0xff]  ;;  %v120_v19 = vld [vmem:[%s662_s3 + $0x48] sm:$0xff] }
   0x5   :  { %430 = vmatpush3.bf16.msra.mxu1 %v429_v8  ;;  %452 = vmatprep.subr.bf16.mxu0 %v481_v0  ;;  %v435_v14 = vpack.c.bf16 %v116_v13, %v115_v12  ;;  %v438_v17 = vpack.c.bf16 %v118_v16, %v117_v15  ;;  %v119_v18 = vld [vmem:[%s662_s3 + $0x40] sm:$0xff]  ;;  %v121_v21 = vld [vmem:[%s662_s3 + $0x50] sm:$0xff]  ;;  %v122_v22 = vld [vmem:[%s662_s3 + $0x58] sm:$0xff] }
   0x6   :  { %431 = vmatprep.subr.bf16.mxu1 %v481_v0  ;;  %v441_v20 = vpack.c.bf16 %v120_v19, %v119_v18  ;;  %v444_v23 = vpack.c.bf16 %v122_v22, %v121_v21  ;;  %v123_v24 = vld [vmem:[%s662_s3 + $0x60] sm:$0xff]  ;;  %v124_v25 = vld [vmem:[%s662_s3 + $0x68] sm:$0xff]  ;;  %v125_v27 = vld [vmem:[%s662_s3 + $0x70] sm:$0xff] }
   0x7   :  { %353 = vmatmul.mubr.msk.f32.vlgmr.msra.gmra.mrb[0].mxu0 %vm36_vm1, %v26_v10  ;;  %v447_v26 = vpack.c.bf16 %v124_v25, %v123_v24  ;;  %v126_v28 = vld [vmem:[%s662_s3 + $0x78] sm:$0xff]  ;;  %v205_v30 = vld [vmem:[%s664_s5] sm:$0xff]  ;;  %v206_v31 = vld [vmem:[%s664_s5 + $0x8] sm:$0xff] }
   0x8   :  { %422 = vmatprep.mubr.msk.f32.mxu0 %vm482_vm0, %v483_v3  ;;  %v450_v29 = vpack.c.bf16 %v126_v28, %v125_v27  ;;  %v207_v32 = vld [vmem:[%s664_s5 + $0x10] sm:$0xff]  ;;  %v453_v33 = vpack.c.bf16 %v206_v31, %v205_v30  ;;  %v208_v34 = vld [vmem:[%s664_s5 + $0x18] sm:$0xff]  ;;  %v209_v36 = vld [vmem:[%s664_s5 + $0x20] sm:$0xff] }
   0x9   :  { %433 = vmatpush3.bf16.msra.mxu1 %v432_v11  ;;  %v456_v35 = vpack.c.bf16 %v208_v34, %v207_v32  ;;  %v210_v37 = vld [vmem:[%s664_s5 + $0x28] sm:$0xff]  ;;  %v211_v39 = vld [vmem:[%s664_s5 + $0x30] sm:$0xff]  ;;  %v212_v40 = vld [vmem:[%s664_s5 + $0x38] sm:$0xff] }
   0xa   :  { %434 = vmatprep.subr.bf16.mxu1 %v481_v0  ;;  %454 = vmatpush3.bf16.msra.mxu0 %v453_v33  ;;  %v459_v38 = vpack.c.bf16 %v210_v37, %v209_v36  ;;  %v462_v41 = vpack.c.bf16 %v212_v40, %v211_v39  ;;  %v213_v42 = vld [vmem:[%s664_s5 + $0x40] sm:$0xff]  ;;  %v214_v43 = vld [vmem:[%s664_s5 + $0x48] sm:$0xff]  ;;  %v215_v45 = vld [vmem:[%s664_s5 + $0x50] sm:$0xff] }
   0xb   :  { %455 = vmatprep.subr.bf16.mxu0 %v481_v0  ;;  %v465_v44 = vpack.c.bf16 %v214_v43, %v213_v42  ;;  %v216_v46 = vld [vmem:[%s664_s5 + $0x58] sm:$0xff]  ;;  %v217_v48 = vld [vmem:[%s664_s5 + $0x60] sm:$0xff]  ;;  %v218_v49 = vld [vmem:[%s664_s5 + $0x68] sm:$0xff] }
   0xc   :  { %v468_v47 = vpack.c.bf16 %v216_v46, %v215_v45  ;;  %v471_v50 = vpack.c.bf16 %v218_v49, %v217_v48  ;;  %v307_v51 = vld [vmem:[%s665_s2] ss:$0 sm:$0xff]  ;;  %v219_v56 = vld [vmem:[%s664_s5 + $0x70] sm:$0xff]  ;;  %v220_v57 = vld [vmem:[%s664_s5 + $0x78] sm:$0xff] }
   0xd   :  { %436 = vmatpush3.bf16.msra.mxu1 %v435_v14  ;;  %v474_v58 = vpack.c.bf16 %v220_v57, %v219_v56  ;;  %v309_v59 = vld [vmem:[%s666_s4] ss:$0 sm:$0xff] }
   0xe   :  { %437 = vmatprep.subr.bf16.mxu1 %v481_v0  ;;  %457 = vmatpush3.bf16.msra.mxu0 %v456_v35 }
   0xf   :  { %458 = vmatprep.subr.bf16.mxu0 %v481_v0 }
  0x11   :  { %439 = vmatpush3.bf16.msra.mxu1 %v438_v17 }
  0x12   :  { %440 = vmatprep.subr.bf16.mxu1 %v481_v0  ;;  %460 = vmatpush3.bf16.msra.mxu0 %v459_v38 }
  0x13   :  { %461 = vmatprep.subr.bf16.mxu0 %v481_v0 }
  0x15   :  { %442 = vmatpush3.bf16.msra.mxu1 %v441_v20 }
  0x16   :  { %443 = vmatprep.subr.bf16.mxu1 %v481_v0  ;;  %463 = vmatpush3.bf16.msra.mxu0 %v462_v41 }
  0x17   :  { %464 = vmatprep.subr.bf16.mxu0 %v481_v0 }
  0x19   :  { %445 = vmatpush3.bf16.msra.mxu1 %v444_v23 }
  0x1a   :  { %446 = vmatprep.subr.bf16.mxu1 %v481_v0  ;;  %466 = vmatpush3.bf16.msra.mxu0 %v465_v44 }
  0x1b   :  { %467 = vmatprep.subr.bf16.mxu0 %v481_v0 }
  0x1d   :  { %448 = vmatpush3.bf16.msra.mxu1 %v447_v26 }
  0x1e   :  { %449 = vmatprep.subr.bf16.mxu1 %v481_v0  ;;  %469 = vmatpush3.bf16.msra.mxu0 %v468_v47 }
  0x1f   :  { %470 = vmatprep.subr.bf16.mxu0 %v481_v0 }
  0x21   :  { %451 = vmatpush3.bf16.msra.mxu1 %v450_v29 }
  0x22   :  { %472 = vmatpush3.bf16.msra.mxu0 %v471_v50 }
  0x23   :  { %473 = vmatprep.subr.bf16.mxu0 %v481_v0  ;;  %v310_v0 = vld [vmem:[%s667_s6] ss:$0 sm:$0xff] }
  0x26   :  { %475 = vmatpush3.bf16.msra.mxu0 %v474_v58 }
  0xda   :  { %v106_v52 = vpop.f32.mrb[0].mxu0 }
  0xdb   :  { %v107_v53 = vadd.f32 %v307_v51, %v106_v52  ;;  %v354_v54 = vpop.f32.mrb[1].mxu0 }
  0xdd   :  { %v110_v55 = vmax.f32 %v107_v53, 0.0 }
  0xdf   :  { %388 = vmatmul.mubr.f32.vlgmr.msra.gmra.mrb[0].mxu1 %v110_v55 }
 0x1b2   :  { %v200_v60 = vpop.f32.mrb[0].mxu1 }
 0x1b3   :  { %v201_v61 = vadd.f32 %v309_v59, %v200_v60  ;;  %v389_v62 = vpop.f32.mrb[1].mxu1 }
 0x1b5   :  { %v204_v63 = vmax.f32 %v201_v61, 0.0 }
 0x1b7   :  { %423 = vmatmul.mubr.f32.vlgmr.msra.gmra.mrb[2].mxu0 %v204_v63 }
 0x28a   :  { %v294_v1 = vpop.f32.mrb[2].mxu0 }
 0x28b   :  { %v295_v2 = vadd.f32 %v310_v0, %v294_v1  ;;  %v424_v3 = vpop.f32.mrb[3].mxu0 }
 0x28d   :  { %479 = vtanh.f32 %v295_v2 }
 0x297   :  { %v480_v4 = vpop.eup %479 }
 0x298   :  { %v299_v5 = vadd.f32 1.0, %v480_v4 }
 0x29a   :  { %v300_v6 = vmul.f32 5.0, %v299_v5 }
 0x29c   :  { %302 = vst.msk [vmem:[%s668_s7] sm:$0xff] %vm301_vm2, %v300_v6 }

</bundles_post_ra>
